<compile_context>
chip_gen: v5e
topology: v5e:2x2
jax: 0.10.0
libtpu: 0.0.40
codegen_flags: <defaults>
</compile_context>

<pallas_src>
import functools

import jax
import jax.numpy as jnp
from jax import lax
from jax.experimental import pallas as pl
from jax.experimental.pallas import tpu as pltpu

THRESHOLD = 0.3
LAPLACE_WEIGHT = 0.5

# Fixed (non-trainable) 3x3 kernels from the PyTorch __init__ (used only by the
# pure-JAX reference; the Pallas kernels use the separable form).
SOBEL_X = ((-1.0, 0.0, 1.0), (-2.0, 0.0, 2.0), (-1.0, 0.0, 1.0))
SOBEL_Y = ((-1.0, -2.0, -1.0), (0.0, 0.0, 0.0), (1.0, 2.0, 1.0))
LAPLACE = ((-1.0, -1.0, -1.0), (-1.0, 8.0, -1.0), (-1.0, -1.0, -1.0))

# Rough count of live f32 arrays per block (double-buffered I/O + temporaries),
# used only for VMEM-budget decisions.
_LIVE_FACTOR = 14


def _round_up(v, m):
    return ((v + m - 1) // m) * m


def _vmem_capacity_bytes():
    """Generation-aware VMEM capacity (falls back to the smallest, v7x)."""
    try:
        info = pltpu.get_tpu_info()
        cap = getattr(info, "vmem_capacity_bytes", None)
        if cap:
            return int(cap)
    except Exception:
        pass
    return 64 * 1024 * 1024


# ---------------------------------------------------------------------------
# Shared in-kernel stencil helpers.
# ---------------------------------------------------------------------------

def _hshift(a, col_iota, last_col):
    """Left/right lane neighbours of `a` with zero (conv) boundary columns."""
    wb = a.shape[-1]
    left = jnp.where(col_iota == 0, 0.0, pltpu.roll(a, shift=1, axis=1))
    right = jnp.where(col_iota == last_col, 0.0, pltpu.roll(a, shift=wb - 1, axis=1))
    return left, right


# ---------------------------------------------------------------------------
# Path A / C: one whole image per grid step (single pass, single HBM r/w).
# ---------------------------------------------------------------------------

def _image_kernel(x_ref, o_ref, *, real_h, real_w):
    """x_ref/o_ref: (1, Hb, Wb) f32.  Real pixels at rows [0,real_h), cols
    [0,real_w); any extra rows/cols (alignment padding) are zeros."""
    _, hb, wb = x_ref.shape
    x = x_ref[0]                                             # (Hb, Wb)

    row = lax.broadcasted_iota(jnp.int32, (hb, wb), 0)
    col = lax.broadcasted_iota(jnp.int32, (hb, wb), 1)

    # Separable row combines shared by Sobel-x, Sobel-y and Laplace.
    xl, xr = _hshift(x, col, real_w - 1)
    hd = xr - xl                                             # +-(x[j+1]-x[j-1])
    h121 = xl + 2.0 * x + xr
    h111 = xl + x + xr

    def up(a):        # value from the row above, zero at the image top
        return jnp.where(row == 0, 0.0, pltpu.roll(a, shift=1, axis=0))

    def dn(a):        # value from the row below, zero at the image bottom
        return jnp.where(row == real_h - 1, 0.0, pltpu.roll(a, shift=hb - 1, axis=0))

    gx = up(hd) + 2.0 * hd + dn(hd)                          # Sobel-x (up to sign)
    gy = dn(h121) - up(h121)                                 # Sobel-y
    m = gx * gx + gy * gy                                    # |grad|^2
    lap = 9.0 * x - (up(h111) + h111 + dn(h111))             # 8*c - 8 neighbours

    if real_h != hb or real_w != wb:                         # only when padded
        m_red = jnp.where((row < real_h) & (col < real_w), m, 0.0)
    else:
        m_red = m

    # |grad|/(max|grad|+1e-8) > T  <=>  m > (T*(sqrt(max m)+1e-8))^2
    t = THRESHOLD * (jnp.sqrt(jnp.max(m_red)) + 1e-8)
    enhanced = jnp.where(m > t * t, x + LAPLACE_WEIGHT * lap, x)
    o_ref[0] = jnp.clip(enhanced, 0.0, 1.0)


def _run_whole_image(x3, vmem_limit):
    n, h, w = x3.shape
    hp, wp = _round_up(h, 8), _round_up(w, 128)
    padded = (hp != h) or (wp != w)
    # Aligned inputs: no pad at all (1 HBM read + 1 HBM write, total).
    # Unaligned inputs: one fused alignment pad (lane-dense layout) + slice.
    xin = x3 if not padded else jnp.pad(x3, ((0, 0), (0, hp - h), (0, wp - w)))

    out = pl.pallas_call(
        functools.partial(_image_kernel, real_h=h, real_w=w),
        out_shape=jax.ShapeDtypeStruct((n, hp, wp), jnp.float32),
        grid_spec=pltpu.PrefetchScalarGridSpec(
            num_scalar_prefetch=0,
            grid=(n,),
            in_specs=[pl.BlockSpec((1, hp, wp), lambda b: (b, 0, 0))],
            out_specs=pl.BlockSpec((1, hp, wp), lambda b: (b, 0, 0)),
        ),
        compiler_params=pltpu.CompilerParams(
            dimension_semantics=("parallel",),
            vmem_limit_bytes=vmem_limit,
        ),
    )(xin)

    return out if not padded else out[:, :h, :w]


# ---------------------------------------------------------------------------
# Path B: two-pass row-strip scheme (large images / small batch).
#   pass 1: per-strip max |grad|^2   -> wrapper folds to per-image threshold
#   pass 2: recompute stencil per strip, apply mask, write real output.
# Requires W % 128 == 0 and strip_rows | H (strip_rows % 8 == 0).
# ---------------------------------------------------------------------------

def _strip_terms(x, top, bot, *, real_w, with_lap):
    rs, wb = x.shape
    lrow = lax.broadcasted_iota(jnp.int32, (rs, wb), 0)
    col = lax.broadcasted_iota(jnp.int32, (rs, wb), 1)
    col1 = lax.broadcasted_iota(jnp.int32, (1, wb), 1)
    last = real_w - 1

    xl, xr = _hshift(x, col, last)
    hd = xr - xl
    h121 = xl + 2.0 * x + xr
    tl, tr = _hshift(top, col1, last)
    td, t121 = tr - tl, tl + 2.0 * top + tr
    bl, br = _hshift(bot, col1, last)
    bd, b121 = br - bl, bl + 2.0 * bot + br

    def up(a, halo):   # row above; local row 0 comes from the top halo row
        return jnp.where(lrow == 0, halo, pltpu.roll(a, shift=1, axis=0))

    def dn(a, halo):   # row below; local row rs-1 comes from the bottom halo row
        return jnp.where(lrow == rs - 1, halo, pltpu.roll(a, shift=rs - 1, axis=0))

    gx = up(hd, td) + 2.0 * hd + dn(hd, bd)
    gy = dn(h121, b121) - up(h121, t121)
    m = gx * gx + gy * gy
    if not with_lap:
        return m, None

    h111 = xl + x + xr
    t111 = tl + top + tr
    b111 = bl + bot + br
    lap = 9.0 * x - (up(h111, t111) + h111 + dn(h111, b111))
    return m, lap


def _strip_max_kernel(x_ref, top_ref, bot_ref, mx_ref, *, real_w):
    x = x_ref[0]                    # (rs, W)
    top = top_ref[0, 0]             # (1, W) halo row above the strip (0 at image top)
    bot = bot_ref[0, 0]             # (1, W) halo row below the strip (0 at image bottom)
    m, _ = _strip_terms(x, top, bot, real_w=real_w, with_lap=False)
    mx_ref[...] = jnp.broadcast_to(jnp.max(m), mx_ref.shape)


def _strip_apply_kernel(x_ref, top_ref, bot_ref, t_ref, o_ref, *, real_w):
    x = x_ref[0]
    top = top_ref[0, 0]
    bot = bot_ref[0, 0]
    m, lap = _strip_terms(x, top, bot, real_w=real_w, with_lap=True)
    tsq = jnp.max(t_ref[...])       # per-image squared threshold (all lanes equal)
    enhanced = jnp.where(m > tsq, x + LAPLACE_WEIGHT * lap, x)
    o_ref[0] = jnp.clip(enhanced, 0.0, 1.0)


def _run_two_pass(x3, rs, vmem_limit):
    n, h, w = x3.shape
    s_cnt = h // rs

    # Halo rows: top[b, s] = x[b, s*rs - 1] (zeros for s == 0),
    #            bot[b, s] = x[b, (s+1)*rs] (zeros for the last strip).
    # Tiny strided slices: ~2 rows of HBM traffic per strip.
    top = jnp.pad(x3, ((0, 0), (1, 0), (0, 0)))[:, 0:(s_cnt - 1) * rs + 1:rs, :]
    bot = jnp.pad(x3, ((0, 0), (0, 1), (0, 0)))[:, rs::rs, :]
    top = top[:, :, None, :]        # (n, s_cnt, 1, w)
    bot = bot[:, :, None, :]

    cparams = pltpu.CompilerParams(
        dimension_semantics=("parallel", "parallel"),
        vmem_limit_bytes=vmem_limit,
    )

    # Pass 1: per-strip max |grad|^2.
    strip_mx = pl.pallas_call(
        functools.partial(_strip_max_kernel, real_w=w),
        out_shape=jax.ShapeDtypeStruct((n, s_cnt, 1, 128), jnp.float32),
        grid_spec=pltpu.PrefetchScalarGridSpec(
            num_scalar_prefetch=0,
            grid=(n, s_cnt),
            in_specs=[
                pl.BlockSpec((1, rs, w), lambda b, s: (b, s, 0)),
                pl.BlockSpec((1, 1, 1, w), lambda b, s: (b, s, 0, 0)),
                pl.BlockSpec((1, 1, 1, w), lambda b, s: (b, s, 0, 0)),
            ],
            out_specs=pl.BlockSpec((1, 1, 1, 128), lambda b, s: (b, s, 0, 0)),
        ),
        compiler_params=cparams,
    )(x3, top, bot)

    # Fold to a per-image squared threshold (tiny (n,)-sized work).
    m_max = jnp.max(strip_mx, axis=(1, 2, 3))                       # (n,)
    tval = THRESHOLD * (jnp.sqrt(m_max) + 1e-8)
    tsq = jnp.broadcast_to((tval * tval)[:, None, None, None], (n, 1, 1, 128))
    tsq = tsq.astype(jnp.float32)

    # Pass 2: recompute the stencil and apply the edge-guided enhancement.
    out = pl.pallas_call(
        functools.partial(_strip_apply_kernel, real_w=w),
        out_shape=jax.ShapeDtypeStruct((n, h, w), jnp.float32),
        grid_spec=pltpu.PrefetchScalarGridSpec(
            num_scalar_prefetch=0,
            grid=(n, s_cnt),
            in_specs=[
                pl.BlockSpec((1, rs, w), lambda b, s: (b, s, 0)),
                pl.BlockSpec((1, 1, 1, w), lambda b, s: (b, s, 0, 0)),
                pl.BlockSpec((1, 1, 1, w), lambda b, s: (b, s, 0, 0)),
                pl.BlockSpec((1, 1, 1, 128), lambda b, s: (b, 0, 0, 0)),
            ],
            out_specs=pl.BlockSpec((1, rs, w), lambda b, s: (b, s, 0)),
        ),
        compiler_params=cparams,
    )(x3, top, bot, tsq)
    return out


def _pick_strip_rows(h, w, budget_bytes):
    """Largest strip height (multiple of 8, divides H, >= 2 strips, <= 256 rows)
    whose estimated live footprint fits the budget."""
    best = None
    r = 8
    top = min(h // 2, 256)
    while r <= top:
        if h % r == 0 and _LIVE_FACTOR * r * w * 4 <= budget_bytes:
            best = r
        r += 8
    return best


# ---------------------------------------------------------------------------
# Public wrapper.
# ---------------------------------------------------------------------------

def edge_guided_laplacian(x, *, force_two_pass=False, strip_rows=None):
    """x: (N, 1, H, W) float32 -> (N, 1, H, W) float32."""
    n, c, h, w = x.shape
    if c != 1:
        raise ValueError("EdgeGuidedLaplacian is defined for single-channel input")
    x3 = x[:, 0, :, :].astype(jnp.float32)

    cap = _vmem_capacity_bytes()
    vmem_limit = max(32 << 20, min(cap * 3 // 4, 112 << 20))   # ~48MiB v7x, ~96MiB v5e/v6e
    budget = int(vmem_limit * 0.8)

    aligned = (h % 8 == 0) and (w % 128 == 0)
    whole_image_fits = _LIVE_FACTOR * h * w * 4 <= budget

    rs = None
    if aligned:
        if (strip_rows is not None and strip_rows % 8 == 0
                and h % strip_rows == 0 and h // strip_rows >= 2):
            rs = strip_rows
        else:
            rs = _pick_strip_rows(h, w, budget)

    use_two_pass = rs is not None and (
        force_two_pass or (not whole_image_fits) or (n < 2 and h >= 256))

    # TODO(synk): very large images with W not a multiple of 128 still use
    # whole-image blocks (the strip path needs a lane-aligned width).
    if use_two_pass:
        y3 = _run_two_pass(x3, rs, vmem_limit)
    else:
        y3 = _run_whole_image(x3, vmem_limit)
    return y3[:, None, :, :]


# ---------------------------------------------------------------------------
# Pure-JAX reference of the PyTorch forward (for correctness checks).
# ---------------------------------------------------------------------------

def _reference(x):
    def conv(img, k):
        k = jnp.asarray(k, jnp.float32).reshape(1, 1, 3, 3)
        return lax.conv_general_dilated(
            img, k, window_strides=(1, 1), padding="SAME",
            dimension_numbers=("NCHW", "OIHW", "NCHW"))

    gx = conv(x, SOBEL_X)
    gy = conv(x, SOBEL_Y)
    gm = jnp.sqrt(gx ** 2 + gy ** 2)
    gm = gm / (jnp.max(gm, axis=(1, 2, 3), keepdims=True) + 1e-8)
    mask = (gm > THRESHOLD).astype(jnp.float32)
    lap = conv(x, LAPLACE)
    return jnp.clip(x + LAPLACE_WEIGHT * (lap * mask), 0.0, 1.0)


if __name__ == "__main__":
    key = jax.random.PRNGKey(0)
    k1, k2, k3 = jax.random.split(key, 3)

    def _check(y, x):
        r = _reference(x)
        assert y.shape == x.shape, (y.shape, x.shape)
        err = float(jnp.max(jnp.abs(y - r)))
        assert jnp.allclose(y, r, atol=1e-5, rtol=1e-5), err

    # 1) Small unaligned shape (exercises the padded fallback path).
    x_small = jax.random.uniform(k1, (2, 1, 16, 16), dtype=jnp.float32)
    _check(jax.block_until_ready(edge_guided_laplacian(x_small)), x_small)

    # 2) Lane-aligned shape (exercises the pad-free single-pass path).
    x_aligned = jax.random.uniform(k2, (2, 1, 16, 128), dtype=jnp.float32)
    _check(jax.block_until_ready(edge_guided_laplacian(x_aligned)), x_aligned)

    # 3) Two-pass row-strip path (forced, 4 strips of 16 rows).
    x_strips = jax.random.uniform(k3, (2, 1, 64, 128), dtype=jnp.float32)
    _check(jax.block_until_ready(
        edge_guided_laplacian(x_strips, force_two_pass=True, strip_rows=16)), x_strips)

    print("KERNEL_OK")
</pallas_src>

<mosaic_0001>
module attributes {stable_mosaic.version = 11 : i64} {
  func.func @_image_kernel(%arg0: i32, %arg1: memref<1x16x128xf32, #tpu.memory_space<vmem>>, %arg2: memref<1x16x128xf32, #tpu.memory_space<vmem>>) attributes {dimension_semantics = [#tpu.dimension_semantics<parallel>], iteration_bounds = array<i64: 2>, scalar_prefetch = 0 : i64, scratch_operands = 0 : i64, tpu.core_type = #tpu.core_type<tc>, window_params = [{transform_indices = @transform_0, window_bounds = array<i64: 1, 16, 128>}, {transform_indices = @transform_1, window_bounds = array<i64: 1, 16, 128>}]} {
    %c0 = arith.constant 0 : index
    %c0_0 = arith.constant 0 : index
    %c0_1 = arith.constant 0 : index
    %0 = vector.load %arg1[%c0, %c0_0, %c0_1] : memref<1x16x128xf32, #tpu.memory_space<vmem>>, vector<1x16x128xf32>
    %1 = vector.shape_cast %0 : vector<1x16x128xf32> to vector<16x128xf32>
    %2 = tpu.iota {dimensions = array<i32: 0>} : vector<16x128xi32>
    %3 = tpu.iota {dimensions = array<i32: 1>} : vector<16x128xi32>
    %c0_i32 = arith.constant 0 : i32
    %4 = vector.broadcast %c0_i32 : i32 to vector<16x128xi32>
    %5 = arith.cmpi eq, %3, %4 : vector<16x128xi32>
    %c1_i32 = arith.constant 1 : i32
    %6 = tpu.dynamic_rotate %1 by %c1_i32 dim 1 : vector<16x128xf32>, i32 -> vector<16x128xf32>
    %cst = arith.constant 0.000000e+00 : f32
    %7 = vector.broadcast %cst : f32 to vector<16x128xf32>
    %8 = arith.select %5, %7, %6 : vector<16x128xi1>, vector<16x128xf32>
    %c15_i32 = arith.constant 15 : i32
    %9 = vector.broadcast %c15_i32 : i32 to vector<16x128xi32>
    %10 = arith.cmpi eq, %3, %9 : vector<16x128xi32>
    %c127_i32 = arith.constant 127 : i32
    %11 = tpu.dynamic_rotate %1 by %c127_i32 dim 1 : vector<16x128xf32>, i32 -> vector<16x128xf32>
    %cst_2 = arith.constant 0.000000e+00 : f32
    %12 = vector.broadcast %cst_2 : f32 to vector<16x128xf32>
    %13 = arith.select %10, %12, %11 : vector<16x128xi1>, vector<16x128xf32>
    %14 = arith.subf %13, %8 : vector<16x128xf32>
    %cst_3 = arith.constant 2.000000e+00 : f32
    %15 = vector.broadcast %cst_3 : f32 to vector<16x128xf32>
    %16 = arith.mulf %15, %1 : vector<16x128xf32>
    %17 = arith.addf %8, %16 : vector<16x128xf32>
    %18 = arith.addf %17, %13 : vector<16x128xf32>
    %19 = arith.addf %8, %1 : vector<16x128xf32>
    %20 = arith.addf %19, %13 : vector<16x128xf32>
    %c0_i32_4 = arith.constant 0 : i32
    %21 = vector.broadcast %c0_i32_4 : i32 to vector<16x128xi32>
    %22 = arith.cmpi eq, %2, %21 : vector<16x128xi32>
    %c1_i32_5 = arith.constant 1 : i32
    %23 = tpu.dynamic_rotate %14 by %c1_i32_5 dim 0 : vector<16x128xf32>, i32 -> vector<16x128xf32>
    %cst_6 = arith.constant 0.000000e+00 : f32
    %24 = vector.broadcast %cst_6 : f32 to vector<16x128xf32>
    %25 = arith.select %22, %24, %23 : vector<16x128xi1>, vector<16x128xf32>
    %cst_7 = arith.constant 2.000000e+00 : f32
    %26 = vector.broadcast %cst_7 : f32 to vector<16x128xf32>
    %27 = arith.mulf %26, %14 : vector<16x128xf32>
    %28 = arith.addf %25, %27 : vector<16x128xf32>
    %c15_i32_8 = arith.constant 15 : i32
    %29 = vector.broadcast %c15_i32_8 : i32 to vector<16x128xi32>
    %30 = arith.cmpi eq, %2, %29 : vector<16x128xi32>
    %c15_i32_9 = arith.constant 15 : i32
    %31 = tpu.dynamic_rotate %14 by %c15_i32_9 dim 0 : vector<16x128xf32>, i32 -> vector<16x128xf32>
    %cst_10 = arith.constant 0.000000e+00 : f32
    %32 = vector.broadcast %cst_10 : f32 to vector<16x128xf32>
    %33 = arith.select %30, %32, %31 : vector<16x128xi1>, vector<16x128xf32>
    %34 = arith.addf %28, %33 : vector<16x128xf32>
    %c15_i32_11 = arith.constant 15 : i32
    %35 = vector.broadcast %c15_i32_11 : i32 to vector<16x128xi32>
    %36 = arith.cmpi eq, %2, %35 : vector<16x128xi32>
    %c15_i32_12 = arith.constant 15 : i32
    %37 = tpu.dynamic_rotate %18 by %c15_i32_12 dim 0 : vector<16x128xf32>, i32 -> vector<16x128xf32>
    %cst_13 = arith.constant 0.000000e+00 : f32
    %38 = vector.broadcast %cst_13 : f32 to vector<16x128xf32>
    %39 = arith.select %36, %38, %37 : vector<16x128xi1>, vector<16x128xf32>
    %c0_i32_14 = arith.constant 0 : i32
    %40 = vector.broadcast %c0_i32_14 : i32 to vector<16x128xi32>
    %41 = arith.cmpi eq, %2, %40 : vector<16x128xi32>
    %c1_i32_15 = arith.constant 1 : i32
    %42 = tpu.dynamic_rotate %18 by %c1_i32_15 dim 0 : vector<16x128xf32>, i32 -> vector<16x128xf32>
    %cst_16 = arith.constant 0.000000e+00 : f32
    %43 = vector.broadcast %cst_16 : f32 to vector<16x128xf32>
    %44 = arith.select %41, %43, %42 : vector<16x128xi1>, vector<16x128xf32>
    %45 = arith.subf %39, %44 : vector<16x128xf32>
    %46 = arith.mulf %34, %34 : vector<16x128xf32>
    %47 = arith.mulf %45, %45 : vector<16x128xf32>
    %48 = arith.addf %46, %47 : vector<16x128xf32>
    %cst_17 = arith.constant 9.000000e+00 : f32
    %49 = vector.broadcast %cst_17 : f32 to vector<16x128xf32>
    %50 = arith.mulf %49, %1 : vector<16x128xf32>
    %c0_i32_18 = arith.constant 0 : i32
    %51 = vector.broadcast %c0_i32_18 : i32 to vector<16x128xi32>
    %52 = arith.cmpi eq, %2, %51 : vector<16x128xi32>
    %c1_i32_19 = arith.constant 1 : i32
    %53 = tpu.dynamic_rotate %20 by %c1_i32_19 dim 0 : vector<16x128xf32>, i32 -> vector<16x128xf32>
    %cst_20 = arith.constant 0.000000e+00 : f32
    %54 = vector.broadcast %cst_20 : f32 to vector<16x128xf32>
    %55 = arith.select %52, %54, %53 : vector<16x128xi1>, vector<16x128xf32>
    %56 = arith.addf %55, %20 : vector<16x128xf32>
    %c15_i32_21 = arith.constant 15 : i32
    %57 = vector.broadcast %c15_i32_21 : i32 to vector<16x128xi32>
    %58 = arith.cmpi eq, %2, %57 : vector<16x128xi32>
    %c15_i32_22 = arith.constant 15 : i32
    %59 = tpu.dynamic_rotate %20 by %c15_i32_22 dim 0 : vector<16x128xf32>, i32 -> vector<16x128xf32>
    %cst_23 = arith.constant 0.000000e+00 : f32
    %60 = vector.broadcast %cst_23 : f32 to vector<16x128xf32>
    %61 = arith.select %58, %60, %59 : vector<16x128xi1>, vector<16x128xf32>
    %62 = arith.addf %56, %61 : vector<16x128xf32>
    %63 = arith.subf %50, %62 : vector<16x128xf32>
    %c16_i32 = arith.constant 16 : i32
    %64 = vector.broadcast %c16_i32 : i32 to vector<16x128xi32>
    %65 = arith.cmpi slt, %2, %64 : vector<16x128xi32>
    %c16_i32_24 = arith.constant 16 : i32
    %66 = vector.broadcast %c16_i32_24 : i32 to vector<16x128xi32>
    %67 = arith.cmpi slt, %3, %66 : vector<16x128xi32>
    %68 = arith.andi %65, %67 : vector<16x128xi1>
    %cst_25 = arith.constant 0.000000e+00 : f32
    %69 = vector.broadcast %cst_25 : f32 to vector<16x128xf32>
    %70 = arith.select %68, %48, %69 : vector<16x128xi1>, vector<16x128xf32>
    %71 = vector.shape_cast %70 : vector<16x128xf32> to vector<1x16x128xf32>
    %cst_26 = arith.constant dense<0xFF800000> : vector<1xf32>
    %72 = vector.multi_reduction <maximumf>, %71, %cst_26 [1, 2] : vector<1x16x128xf32> to vector<1xf32>
    %73 = vector.shape_cast %72 : vector<1xf32> to vector<1x1x1xf32>
    %74 = vector.extract %73[0, 0, 0] : f32 from vector<1x1x1xf32>
    %75 = math.sqrt %74 : f32
    %cst_27 = arith.constant 9.99999993E-9 : f32
    %76 = arith.addf %75, %cst_27 : f32
    %cst_28 = arith.constant 3.000000e-01 : f32
    %77 = arith.mulf %cst_28, %76 : f32
    %78 = arith.mulf %77, %77 : f32
    %79 = vector.broadcast %78 : f32 to vector<16x128xf32>
    %80 = arith.cmpf ogt, %48, %79 : vector<16x128xf32>
    %cst_29 = arith.constant 5.000000e-01 : f32
    %81 = vector.broadcast %cst_29 : f32 to vector<16x128xf32>
    %82 = arith.mulf %81, %63 : vector<16x128xf32>
    %83 = arith.addf %1, %82 : vector<16x128xf32>
    %84 = arith.select %80, %83, %1 : vector<16x128xi1>, vector<16x128xf32>
    %cst_30 = arith.constant 0.000000e+00 : f32
    %cst_31 = arith.constant 1.000000e+00 : f32
    %85 = vector.broadcast %cst_30 : f32 to vector<16x128xf32>
    %86 = arith.maximumf %85, %84 : vector<16x128xf32>
    %87 = vector.broadcast %cst_31 : f32 to vector<16x128xf32>
    %88 = arith.minimumf %87, %86 : vector<16x128xf32>
    %c0_32 = arith.constant 0 : index
    %c0_33 = arith.constant 0 : index
    %c0_34 = arith.constant 0 : index
    %89 = vector.load %arg2[%c0_32, %c0_33, %c0_34] : memref<1x16x128xf32, #tpu.memory_space<vmem>>, vector<1x16x128xf32>
    %90 = vector.shape_cast %89 : vector<1x16x128xf32> to vector<16x128xf32>
    %91 = vector.shape_cast %88 : vector<16x128xf32> to vector<1x16x128xf32>
    tpu.vector_store %arg2[%c0_32, %c0_33, %c0_34], %91 {strides = array<i32>} : memref<1x16x128xf32, #tpu.memory_space<vmem>>, vector<1x16x128xf32>,
    return
  }
  func.func @transform_0(%arg0: i32) -> (i32, i32, i32) {
    %c0_i32 = arith.constant 0 : i32
    %c0_i32_0 = arith.constant 0 : i32
    %c0_i32_1 = arith.constant 0 : i32
    return %arg0, %c0_i32, %c0_i32_0 : i32, i32, i32
  }
  func.func @transform_1(%arg0: i32) -> (i32, i32, i32) {
    %c0_i32 = arith.constant 0 : i32
    %c0_i32_0 = arith.constant 0 : i32
    %c0_i32_1 = arith.constant 0 : i32
    return %arg0, %c0_i32, %c0_i32_0 : i32, i32, i32
  }
}

</mosaic_0001>

<bundles_post_ra>
// kernel: tpu_custom_call.1
= control target key start
LH: loop header
LB: loop body
LE: loop exit
PB: predicated region body
PF: predicated region fallthrough
CT: control target
= control target key end

     0   :  { %6 = vsyncpa [#allocation3], 0  ;;  %s761_s0 = inlined_call_operand.hbm [shape: f32[2,16,128], index: 0, kind: input, shape index: {}]   ;;  %s762_s1 = inlined_call_operand.hbm [shape: f32[2,16,128], index: 1, kind: output, shape index: {}]  }
   0x1   :  { %8 = vsyncpa [#allocation3 + $0x1], 0 }
   0x2   :  { %9 = vsyncpa [#allocation4], 0 }
   0x3   :  { %11 = vsyncpa [#allocation4 + $0x1], 0  ;;  %s560_s6 = smov 0   ;;  %s562_s7 = smov 0  }
   0x4   :  { %s564_s8 = smov 0   ;;  %s566_s9 = smov 0  }
   0x5 LB: > { %s581_s10 = sadd.s32 4294967295, %s542_s9   ;;  %s372_s11 = sadd.s32 4294967294, %s542_s9   ;;  %s542_s9 = sphi %s566_s9, %s772_s9   ;;  %s538_s8 = sphi %s564_s8, %s771_s8   ;;  %s534_s7 = sphi %s562_s7, %s770_s7   ;;  %s530_s6 = sphi %s560_s6, %s769_s6  }
   0x6   : > { %s585_s12 = sadd.s32 1, %s542_s9   ;;  %s24_s13 = sadd.s32 1, %s538_s8 }
   0x7   : > { %s21_s14 = ssub.s32 %s542_s9, %s585_s12  ;;  %p31_p0 = scmp.ne.s32.totalorder %s538_s8, %s534_s7 }
   0x8   : > { %p22_p1 = scmp.eq.s32.totalorder %s21_s14, 0  ;;  %p32_p2 = scmp.eq.s32.totalorder %s542_s9, 0 }
   0x9   : > { %p37_p3 = scmp.ne.s32.totalorder %s534_s7, %s530_s6  ;;  %p38_p4 = scmp.eq.s32.totalorder %s581_s10, 0 }
   0xa   : > { %s597_s15 = scalar_select %p22_p1, %s538_s8, %s24_s13  }
   0xb   : > { %p599_p5 = por %p32_p2, %p31_p0  ;;  %p603_p6 = por %p38_p4, %p37_p3 }
   0xc   : > { %p61_p7 = scmp.eq.s32.totalorder %s581_s10, 1  ;;  %p67_p8 = scmp.eq.s32.totalorder %s372_s11, 1 }
   0xd   : > { %p404_p10 = scmp.lt.s32.totalorder %s542_s9, 2  ;;  %s87_s20 = sand.u32 1, %s538_s8  }
   0xe   : > { %p610_p11 = por %p61_p7, %p31_p0  ;;  %p614_p12 = por %p67_p8, %p37_p3 }
   0xf   : > { %s386_s21 = sshll.u32 %s542_s9, 4  ;;  %s375_s22 = sshll.u32 %s87_s20, 4 }
  0x10   : > { %s96_s25 = scalar_lea.hbm %s761_s0, %s386_s21  ;;  %s91_s27 = scalar_lea.vmem [#allocation2], %s375_s22 }
  0x11   : > { %s97_s26 = sshll.u32 %s96_s25, 4  ;;  %s99_s28 = sshll.u32 %s91_s27, 4  ;;  %s98_s26 = int_to_ptr.hbm [resolvable:$true] %s97_s26  ;;  %s100_s28 = int_to_ptr.vmem [resolvable:$true] %s99_s28 }
  0x12   : > { %p625_p13 = pnand %p404_p10, %p599_p5  ;;  %p378_p0 = scmp.ge.s32.totalorder %s542_s9, 1 }
  0x13   : > { %p107_p1 = scmp.lt.s32.totalorder %s542_s9, 3  ;;  %s88_s30 = scalar_lea.sflag [#allocation3], %s87_s20 }
  0x14   : > { %s446_s2 = sshra.s32 %s98_s26, 4  ;;  %p450_p3 = pneg %p625_p13  ;;  %s447_s2 = int_to_ptr.hbm [resolvable:$true] %s446_s2 }
  0x15   : > { %s448_s3 = scalar_lea.hbm %s447_s2, 16  ;;  %s453_s11 = scalar_lea.hbm %s761_s0, 32 }
  0x16   : > { %p449_p2 = scmp.ne.s32.totalorder %s447_s2, %s448_s3  ;;  %p454_p5 = scmp.lt.s32.totalorder %s447_s2, %s761_s0 }
  0x17   : > { %p455_p8 = scmp.lt.s32.totalorder %s453_s11, %s448_s3 }
  0x18   : > { %p451_p4 = pnand %p450_p3, %p449_p2 }
  0x19   : > { %p456_p10 = por %p455_p8, %p454_p5 }
  0x1a   : > { %p452_p7 = pneg %p451_p4 }
  0x1c   : > { %p457_p9 = pnand %p456_p10, %p452_p7 }
  0x1e   : > { %460 = shalt.err (!%p457_p9)
}
  0x1f   : > { %s544_s16 = smov 128   ;;  %s545_s20 = smov 8  }
  0x20   : > { %399 = dma.hbm_to_vmem [thread:$0]  (!%p625_p13), %s98_s26, 256, %s100_s28, %s88_s30, %s544_s16, %s544_s16, %s545_s20  }
  0x21   : > { %p108_p2 = pnand %p378_p0, %p107_p1 }
  0x22   : > { %s646_s21 = sand.u32 (!%p108_p2), 1, %s534_s7  }
  0x23   : > { %111 = sbr.rel (%p108_p2) target bundleno = 453 (0x1c5), region = 24  ;;  %s379_s22 = sshll.u32 (!%p108_p2), %s646_s21, 4 }
  0x24   : > { %s114_s23 = scalar_lea.sflag (!%p108_p2), [#allocation3], %s646_s21  ;;  %s117_s24 = scalar_lea.vmem (!%p108_p2), [#allocation2], %s379_s22 }
  0x28   : > { %521 = dma.done.wait (%p603_p6), %s114_s23, 256  }
  0x29   : > { %523 = vsyncadd (%p603_p6), %s114_s23, 4294967040  ;;  %v656_v0 = vld [vmem:[%s117_s24] sm:$0xff]  ;;  %s546_s25 = smov 127   ;;  %s547_s26 = smov 1   ;;  %v660_v1 = vld [vmem:[%s117_s24 + $0x8] sm:$0xff]  ;;  %v139_v2 = vlaneseq }
  0x2a   : > { %152 = vrot.lane.b32.xlu1 %v656_v0, %s546_s25  ;;  %145 = vrot.lane.b32.xlu0 %v656_v0, %s547_s26  ;;  %v160_v4 = vmul.f32 2.0, %v656_v0  ;;  %v161_v13 = vmul.f32 2.0, %v660_v1  ;;  %s387_s30 = sshll.u32 %s581_s10, 4  ;;  %s136_s11 = scalar_lea.vmem [#allocation5], %s379_s22 }
  0x2b   : > { %v664_v3 = vand.u32 127, %v139_v2  ;;  %v671_v8 = vshrl.u32 %v139_v2, 7  ;;  %s295_s5 = scalar_lea.hbm %s762_s1, %s387_s30  ;;  %s296_s10 = sshll.u32 %s136_s11, 4  ;;  %s297_s10 = int_to_ptr.vmem [resolvable:$true] %s296_s10 }
  0x2c   : > { %s298_s13 = sshll.u32 %s295_s5, 4  ;;  %s284_s14 = scalar_lea.sflag [#allocation4], %s646_s21  ;;  %s299_s13 = int_to_ptr.hbm [resolvable:$true] %s298_s13 }
  0x2d   : > { %vm144_vm0 = vcmp.eq.s32.totalorder %v664_v3, 0  ;;  %vm151_vm1 = vcmp.eq.s32.totalorder %v664_v3, 15  ;;  %v141_v14 = vadd.s32 8, %v671_v8  ;;  %vm174_vm2 = vcmp.lt.s32.totalorder %v671_v8, 1  ;;  %s490_s16 = sshra.s32 %s299_s13, 4  ;;  %s496_s24 = scalar_lea.hbm %s762_s1, 32  ;;  %s491_s16 = int_to_ptr.hbm [resolvable:$true] %s490_s16 }
  0x2e   : > { %vm187_vm3 = vcmp.lt.s32.totalorder %v671_v8, 7  ;;  %vm170_vm4 = vcmp.eq.s32.totalorder %v671_v8, 0  ;;  %vm236_vm6 = vcmp.lt.s32.totalorder %v664_v3, 16  ;;  %s492_s20 = scalar_lea.hbm %s491_s16, 16  ;;  %p497_p0 = scmp.lt.s32.totalorder %s491_s16, %s762_s1 }
  0x2f   : > { %vm184_vm5 = vcmp.eq.s32.totalorder %v141_v14, 15  ;;  %p493_p6 = scmp.ne.s32.totalorder %s491_s16, %s492_s20  ;;  %p498_p1 = scmp.lt.s32.totalorder %s496_s24, %s492_s20 }
  0x31   : > { %p494_p9 = pnand %p493_p6, %p610_p11  ;;  %p499_p3 = por %p498_p1, %p497_p0 }
  0x32   : > { %154 = vrot.lane.b32.xlu1 %v660_v1, %s546_s25  ;;  %147 = vrot.lane.b32.xlu0 %v660_v1, %s547_s26 }
  0x33   : > { %p495_p13 = pneg %p494_p9 }
  0x35   : > { %p500_p4 = pnand %p499_p3, %p495_p13 }
  0x9c   : > { %v153_v5 = vpop.permute.xlu1 %152  ;;  %v146_v6 = vpop.permute.xlu0 %145 }
  0x9d   : > { %v149_v7 = vsel %vm144_vm0, 0.0, %v146_v6  ;;  %v156_v10 = vsel %vm151_vm1, 0.0, %v153_v5 }
  0x9e   : > { %v166_v9 = vadd.f32 %v149_v7, %v656_v0  ;;  %v162_v11 = vadd.f32 %v160_v4, %v149_v7  ;;  %v158_v15 = vsub.f32 %v156_v10, %v149_v7 }
  0xa0   : > { %v168_v12 = vadd.f32 %v166_v9, %v156_v10  ;;  %v164_v16 = vadd.f32 %v162_v11, %v156_v10  ;;  %v172_v24 = vrot.slane %v158_v15, 7  ;;  %v179_v25 = vmul.f32 2.0, %v158_v15 }
  0xa1   : > { %v185_v26 = vrot.slane %v158_v15, 1 }
  0xa2   : > { %v194_v27 = vrot.slane %v164_v16, 1  ;;  %v200_v32 = vrot.slane %v164_v16, 7  ;;  %v216_v33 = vrot.slane %v168_v12, 7  ;;  %v224_v34 = vrot.slane %v168_v12, 1 }
  0xa4   : > { %v155_v17 = vpop.permute.xlu1 %154  ;;  %v148_v18 = vpop.permute.xlu0 %147 }
  0xa5   : > { %v157_v19 = vsel %vm151_vm1, 0.0, %v155_v17  ;;  %v150_v20 = vsel %vm144_vm0, 0.0, %v148_v18 }
  0xa6   : > { %v159_v21 = vsub.f32 %v157_v19, %v150_v20  ;;  %v163_v22 = vadd.f32 %v161_v13, %v150_v20  ;;  %v167_v23 = vadd.f32 %v150_v20, %v660_v1 }
  0xa8   : > { %v165_v28 = vadd.f32 %v163_v22, %v157_v19  ;;  %v169_v29 = vadd.f32 %v167_v23, %v157_v19  ;;  %v173_v30 = vrot.slane %v159_v21, 7  ;;  %v180_v31 = vmul.f32 2.0, %v159_v21 }
  0xa9   : > { %v186_v35 = vrot.slane %v159_v21, 1 }
  0xaa   : > { %v195_v36 = vrot.slane %v165_v28, 1  ;;  %v201_v37 = vrot.slane %v165_v28, 7  ;;  %v217_v38 = vrot.slane %v169_v29, 7  ;;  %v225_v39 = vrot.slane %v169_v29, 1 }
  0xab   : > { %v175_v40 = vsel %vm174_vm2, %v172_v24, %v173_v30  ;;  %v176_v41 = vsel %vm174_vm2, %v173_v30, %v172_v24  ;;  %v188_v42 = vsel %vm187_vm3, %v185_v26, %v186_v35  ;;  %v189_v43 = vsel %vm187_vm3, %v186_v35, %v185_v26 }
  0xac   : > { %v218_v44 = vsel %vm174_vm2, %v216_v33, %v217_v38  ;;  %v226_v45 = vsel %vm187_vm3, %v224_v34, %v225_v39  ;;  %v177_v46 = vsel %vm170_vm4, 0.0, %v176_v41  ;;  %v182_v47 = vadd.f32 %v180_v31, %v175_v40 }
  0xad   : > { %v223_v48 = vadd.f32 %v218_v44, %v169_v29  ;;  %v181_v49 = vadd.f32 %v179_v25, %v177_v46  ;;  %v191_v50 = vsel %vm184_vm5, 0.0, %v189_v43  ;;  %v196_v51 = vsel %vm187_vm3, %v194_v27, %v195_v36 }
  0xae   : > { %v193_v52 = vadd.f32 %v191_v50, %v182_v47  ;;  %v197_v53 = vsel %vm187_vm3, %v195_v36, %v194_v27  ;;  %v202_v54 = vsel %vm174_vm2, %v200_v32, %v201_v37  ;;  %v203_v55 = vsel %vm174_vm2, %v201_v37, %v200_v32 }
  0xaf   : > { %v192_v56 = vadd.f32 %v188_v42, %v181_v49  ;;  %v199_v57 = vsel %vm184_vm5, 0.0, %v197_v53  ;;  %v204_v58 = vsel %vm170_vm4, 0.0, %v203_v55  ;;  %v219_v59 = vsel %vm174_vm2, %v217_v38, %v216_v33 }
  0xb0   : > { %v206_v60 = vsub.f32 %v196_v51, %v204_v58  ;;  %v207_v61 = vsub.f32 %v199_v57, %v202_v54  ;;  %v209_v62 = vmul.f32 %v193_v52, %v193_v52  ;;  %v220_v63 = vsel %vm170_vm4, 0.0, %v219_v59 }
  0xb1   : > { %v208_v2 = vmul.f32 %v192_v56, %v192_v56  ;;  %v222_v4 = vadd.f32 %v220_v63, %v168_v12  ;;  %v227_v5 = vsel %vm187_vm3, %v225_v39, %v224_v34  ;;  %v214_v33 = vmul.f32 9.0, %v656_v0 }
  0xb2   : > { %v210_v6 = vmul.f32 %v206_v60, %v206_v60  ;;  %v211_v7 = vmul.f32 %v207_v61, %v207_v61  ;;  %v229_v9 = vsel %vm184_vm5, 0.0, %v227_v5  ;;  %v215_v34 = vmul.f32 9.0, %v660_v1 }
  0xb3   : > { %v231_v10 = vadd.f32 %v229_v9, %v223_v48  ;;  %v230_v11 = vadd.f32 %v226_v45, %v222_v4 }
  0xb4   : > { %v212_v13 = vadd.f32 %v210_v6, %v208_v2  ;;  %v213_v15 = vadd.f32 %v211_v7, %v209_v62 }
  0xb5   : > { %v232_v35 = vsub.f32 %v214_v33, %v230_v11  ;;  %v233_v36 = vsub.f32 %v215_v34, %v231_v10 }
  0xb6   : > { %v239_v16 = vsel %vm236_vm6, %v212_v13, 0.0  ;;  %v240_v17 = vsel %vm236_vm6, %v213_v15, 0.0 }
  0xb7   : > { %v241_v18 = vmax.f32 %v239_v16, %v240_v17  ;;  %v271_v37 = vmul.f32 0.5, %v232_v35  ;;  %v272_v38 = vmul.f32 0.5, %v233_v36 }
  0xb9   : > { %242 = vmax.xlane.f32.xlu2 %v241_v18  ;;  %v273_v40 = vadd.f32 %v271_v37, %v656_v0  ;;  %v274_v41 = vadd.f32 %v272_v38, %v660_v1 }
 0x12c   : > { %v243_v19 = vpop.xlane.xlu2 %242 }
 0x12d   : > { %v244_v20 = vrot.slane %v243_v19, 4 }
 0x12f   : > { %v245_v12 = vmax.f32 %v243_v19, %v244_v20 }
 0x131   : > { %v246_v21 = vrot.slane %v245_v12, 2 }
 0x133   : > { %v247_v8 = vmax.f32 %v245_v12, %v246_v21 }
 0x135   : > { %v248_v22 = vrot.slane %v247_v8, 1 }
 0x137   : > { %v249_v23 = vmax.f32 %v247_v8, %v248_v22 }
 0x139   : > { %388 = vpush %v249_v23 }
 0x16a   : > { %s389_s17 = spop %388 }
 0x16b   : > { %v251_v14 = vstv %s389_s17 }
 0x16c   : > { %444 = vrsqrt.f32 %v251_v14  ;;  %vm259_vm7 = vcmp.eq.f32.partialorder %v251_v14, inf  ;;  %v262_v30 = vand.u32 2147483648, %v251_v14  ;;  %vm261_vm8 = vcmp.eq.f32.partialorder %v251_v14, 0.0 }
 0x172   : > { %v445_v24 = vpop.eup %444 }
 0x173   : > { %v253_v3 = vmul.f32 %v445_v24, %v251_v14 }
 0x175   : > { %v254_v25 = vmul.f32 %v445_v24, %v253_v3 }
 0x177   : > { %v255_v26 = vmul.f32 0.5, %v254_v25 }
 0x179   : > { %v256_v27 = vsub.f32 1.5, %v255_v26 }
 0x17b   : > { %v257_v28 = vmul.f32 %v445_v24, %v256_v27 }
 0x17d   : > { %v258_v29 = vmul.f32 %v257_v28, %v251_v14 }
 0x17f   : > { %v260_v31 = vsel %vm259_vm7, %v251_v14, %v258_v29 }
 0x180   : > { %v263_v32 = vsel %vm261_vm8, %v262_v30, %v260_v31 }
 0x181   : > { %390 = vpush %v263_v32 }
 0x1b2   : > { %s391_s27 = spop %390 }
 0x1b3   : > { %s265_s28 = sadd.f32 1e-08, %s391_s27 }
 0x1b5   : > { %s266_s29 = smul.f32 0.3, %s265_s28 }
 0x1b7   : > { %s267_s2 = smul.f32 %s266_s29, %s266_s29 }
 0x1b9   : > { %v268_v39 = vstv %s267_s2 }
 0x1ba   : > { %vm269_vm9 = vcmp.gt.f32.partialorder %v212_v13, %v268_v39  ;;  %vm270_vm10 = vcmp.gt.f32.partialorder %v213_v15, %v268_v39 }
 0x1bb   : > { %v275_v42 = vsel %vm269_vm9, %v273_v40, %v656_v0  ;;  %v276_v43 = vsel %vm270_vm10, %v274_v41, %v660_v1 }
 0x1bc   : > { %v277_v44 = vmax.f32 %v275_v42, 0.0  ;;  %v278_v45 = vmax.f32 %v276_v43, 0.0 }
 0x1be   : > { %v279_v46 = vmin.f32 %v277_v44, 1.0  ;;  %v280_v47 = vmin.f32 %v278_v45, 1.0 }
 0x1c0   : > { %281 = vst [vmem:[%s136_s11] sm:$0xff] %v279_v46 }
 0x1c1   : > { %282 = vst [vmem:[%s136_s11 + $0x8] sm:$0xff] %v280_v47 }
 0x1c2   : > { %503 = shalt.err (!%p500_p4)
}
 0x1c3   : > { %s548_s21 = smov 128   ;;  %s549_s17 = smov 8  }
 0x1c4   : > { %394 = dma.vmem_to_hbm [thread:$0]  (%p610_p11), %s297_s10, 256, %s299_s13, %s284_s14, %s548_s21, %s548_s21, %s549_s17  }
 0x1c5 PF: > { %s313_s27 = sand.u32 1, %s530_s6   ;;  %p768_p7 = scmp.ge.s32.totalorder %s542_s9, 2 }
 0x1c6   : > { %s314_s28 = scalar_lea.sflag [#allocation4], %s313_s27 }
 0x1c7   : > { %p401_p5 = pnand %p768_p7, %p614_p12 }
 0x1c9   : > { %p402_p8 = pneg %p401_p5 }
 0x1cb   : > { %525 = dma.done.wait (%p402_p8), %s314_s28, 256  }
 0x1cc   : > { %527 = vsyncadd (%p402_p8), %s314_s28, 4294967040  ;;  %p14_p10 = scmp.ge.s32.totalorder %s585_s12, 4   ;;  %s769_s6 = smov %s534_s7 }
 0x1cd   : > { %s770_s7 = smov %s538_s8  ;;  %s771_s8 = smov %s597_s15 }
 0x1ce   : > { %s772_s9 = smov %s585_s12  ;;  %16 = sbr.rel (!%p14_p10) target bundleno = 5 (0x5), region = 69 }
 0x1d3   :  { %320 = vsyncpa [#allocation3], 1 }
 0x1d4   :  { %322 = vsyncpa [#allocation3 + $0x1], 1 }
 0x1d5   :  { %323 = vsyncpa [#allocation4], 1 }
 0x1d6   :  { %325 = vsyncpa [#allocation4 + $0x1], 1 }

</bundles_post_ra>
